<compile_context>
chip_gen: v6e
topology: v6e:2x2x1
jax: 0.10.0
libtpu: 0.0.40
codegen_flags: <defaults>
</compile_context>

<pallas_src>
import functools

import jax
import jax.numpy as jnp
from jax.experimental import pallas as pl
from jax.experimental.pallas import tpu as pltpu


def _round_up(x, m):
    return ((x + m - 1) // m) * m


def _pick_tile(dim, candidates):
    """Largest candidate dividing `dim` exactly (dim is pre-padded to 128 so 128 always works)."""
    for c in candidates:
        if dim % c == 0:
            return c
    return dim


def _vmem_capacity_bytes():
    try:
        return int(pltpu.get_tpu_info().vmem_capacity_bytes)
    except Exception:
        return 64 << 20  # conservative default (v7x per-TensorCore VMEM)


def _matmul_bias_kernel(x_ref, w_ref, b_ref, o_ref, acc_ref):
    """One (i, j) output tile; K (hidden) is the innermost reduction axis.

    acc_ref is an f32 VMEM scratch accumulator; the output tile is written
    exactly once (already cast to the output dtype) on the last K step.
    """
    k = pl.program_id(2)

    @pl.when(k == 0)
    def _init():
        # Fold the ensemble-mean bias into the accumulator init instead of
        # zero-init + a separate finalize add (one fewer pass over the tile).
        acc_ref[...] = jnp.broadcast_to(b_ref[...], acc_ref.shape)

    acc_ref[...] += jnp.dot(
        x_ref[...], w_ref[...], preferred_element_type=jnp.float32
    )

    @pl.when(k == pl.num_programs(2) - 1)
    def _finalize():
        o_ref[...] = acc_ref[...].astype(o_ref.dtype)


@functools.partial(jax.jit, static_argnames=("compute_dtype",))
def lora_wrapper_normal_forward(x, weights, biases, *, compute_dtype=None):
    """Ensemble-mean logits of linear backbone heads: mean_e( x @ W_e + b_e ).

    x:       [B, H]
    weights: [E, H, C]
    biases:  [E, C]
    compute_dtype: matmul operand dtype override.  Default: bf16 when x is f32
                   (accumulation is always f32), else x.dtype.
    returns: [B, C] in x.dtype
    """
    B, H = x.shape
    E, H2, C = weights.shape
    assert H2 == H and biases.shape == (E, C)
    out_dtype = x.dtype
    out_itemsize = jnp.dtype(out_dtype).itemsize

    # ---- matmul operand dtype (bf16 by default for f32 inputs) --------------
    if compute_dtype is not None:
        mm_dtype = jnp.dtype(compute_dtype)
    elif jnp.dtype(x.dtype) == jnp.dtype(jnp.float32):
        mm_dtype = jnp.dtype(jnp.bfloat16)
    else:
        mm_dtype = jnp.dtype(x.dtype)
    mm_itemsize = mm_dtype.itemsize
    sublane_mult = {4: 8, 2: 16, 1: 32}.get(mm_itemsize, 8)

    # ---- generation-aware tile candidates / VMEM cap -------------------------
    vmem_cap = _vmem_capacity_bytes()
    big_vmem = vmem_cap >= (96 << 20)          # v5e / v6e: 128 MiB per core
    if big_vmem:
        tn_cands = (1024, 512, 256, 128)
        tm_cands = (512, 384, 256, 128)
        tk_cap = 1024
        vmem_limit_cap = 96 << 20
    else:                                      # v7x (64 MiB VMEM) or unknown
        tn_cands = (512, 256, 128)
        tm_cands = (256, 128)
        tk_cap = 512
        vmem_limit_cap = 48 << 20
    # With these caps the worst-case working set (2*(tm*tk+tk*tn)*itemsize +
    # 2*tm*tn*out + tm*tn*4) stays well under 40 MiB, so v7x's 64 MiB is safe.

    # ---- lane/sublane-friendly padding & tiles -------------------------------
    c_pad = _round_up(C, 128)                  # lane-dense output -> unmasked stores
    tn = _pick_tile(c_pad, tn_cands)

    if B <= 256:
        tm = _round_up(B, sublane_mult)        # batch kept in one sublane-packed tile
        b_pad = tm
    else:
        # pick the tile that minimizes batch padding; tie-break to the bigger tile
        tm = min(tm_cands, key=lambda t: (_round_up(B, t) - B, -t))
        b_pad = _round_up(B, tm)

    if H <= tk_cap:
        tk, h_pad = H, H                       # single K step; full-dim block is legal
    else:
        tk = tk_cap
        h_pad = _round_up(H, tk)               # exact: grid K = h_pad // tk (no fallback)

    # Megacore (v7x has 2 TensorCores): if the natural tiling gives a (1,1,K)
    # grid, shrink tn so a "parallel" axis has extent >= 2.
    if not big_vmem and (b_pad // tm == 1) and (c_pad // tn == 1):
        for cand in (512, 256, 128):
            if cand < tn and c_pad % cand == 0:
                tn = cand
                break

    grid = (b_pad // tm, c_pad // tn, h_pad // tk)

    # ---- ensemble collapse: one fused pass over the E*H*C weights ------------
    w_mm = jnp.mean(weights, axis=0, dtype=jnp.float32).astype(mm_dtype)   # [H, C]
    b_mean = jnp.mean(biases, axis=0, dtype=jnp.float32)                   # [C]
    x_mm = x.astype(mm_dtype)

    if h_pad != H:
        x_mm = jnp.pad(x_mm, ((0, 0), (0, h_pad - H)))
        w_mm = jnp.pad(w_mm, ((0, h_pad - H), (0, 0)))
    if b_pad != B:
        x_mm = jnp.pad(x_mm, ((0, b_pad - B), (0, 0)))
    if c_pad != C:
        w_mm = jnp.pad(w_mm, ((0, 0), (0, c_pad - C)))
        b_mean = jnp.pad(b_mean, ((0, c_pad - C),))
    b2d = b_mean.reshape(1, c_pad)             # f32 bias, folded into acc init

    # ---- VMEM budget / cost hints --------------------------------------------
    est_vmem = (
        2 * (tm * tk + tk * tn) * mm_itemsize   # double-buffered x / W tiles
        + 2 * tn * 4                            # bias tile (f32)
        + 2 * tm * tn * out_itemsize            # output tile
        + tm * tn * 4                           # f32 scratch accumulator
    )
    vmem_limit_bytes = int(min(max(2 * est_vmem + (8 << 20), 16 << 20), vmem_limit_cap))

    cost = pl.CostEstimate(
        flops=2 * b_pad * h_pad * c_pad,
        transcendentals=0,
        bytes_accessed=(b_pad * h_pad + h_pad * c_pad) * mm_itemsize
        + c_pad * 4
        + b_pad * c_pad * out_itemsize,
    )

    out = pl.pallas_call(
        _matmul_bias_kernel,
        out_shape=jax.ShapeDtypeStruct((b_pad, c_pad), out_dtype),
        grid_spec=pltpu.PrefetchScalarGridSpec(
            num_scalar_prefetch=0,
            grid=grid,
            in_specs=[
                pl.BlockSpec((tm, tk), lambda i, j, k: (i, k)),   # x tile
                pl.BlockSpec((tk, tn), lambda i, j, k: (k, j)),   # W tile
                pl.BlockSpec((1, tn), lambda i, j, k: (0, j)),    # bias tile
            ],
            out_specs=pl.BlockSpec((tm, tn), lambda i, j, k: (i, j)),
            scratch_shapes=[pltpu.VMEM((tm, tn), jnp.float32)],
        ),
        compiler_params=pltpu.CompilerParams(
            dimension_semantics=("parallel", "parallel", "arbitrary"),
            vmem_limit_bytes=vmem_limit_bytes,
        ),
        cost_estimate=cost,
    )(x_mm, w_mm, b2d)

    if b_pad != B or c_pad != C:
        out = out[:B, :C]
    return out


if __name__ == "__main__":
    # Small deterministic setup consistent with the module's forward:
    # ensemble of E backbone heads mapping hidden H -> num_classes C.
    B, H, C, E = 8, 32, 16, 3

    key = jax.random.PRNGKey(0)
    kx, kw, kb = jax.random.split(key, 3)

    x = jax.random.normal(kx, (B, H), dtype=jnp.float32)
    weights = jax.random.normal(kw, (E, H, C), dtype=jnp.float32) * 0.05
    biases = jax.random.normal(kb, (E, C), dtype=jnp.float32) * 0.01

    # Pure-JAX reference of the PyTorch semantics: per-member logits, mean over E.
    ref = jnp.mean(jnp.einsum("bh,ehc->ebc", x, weights) + biases[:, None, :], axis=0)

    # Default path: bf16 MXU operands, f32 accumulation.
    out = jax.block_until_ready(lora_wrapper_normal_forward(x, weights, biases))
    assert out.shape == (B, C) and out.dtype == x.dtype
    assert jnp.allclose(out, ref, atol=5e-2, rtol=5e-2)

    # Full-precision path: tight numerical check of the kernel itself.
    out_f32 = jax.block_until_ready(
        lora_wrapper_normal_forward(x, weights, biases, compute_dtype=jnp.float32)
    )
    assert jnp.allclose(out_f32, ref, atol=1e-4, rtol=1e-4)

    print("KERNEL_OK")
</pallas_src>

<mosaic_0001>
module attributes {stable_mosaic.version = 11 : i64} {
  func.func @_matmul_bias_kernel(%arg0: i32, %arg1: i32, %arg2: i32, %arg3: memref<16x32xbf16, #tpu.memory_space<vmem>>, %arg4: memref<32x128xbf16, #tpu.memory_space<vmem>>, %arg5: memref<1x128xf32, #tpu.memory_space<vmem>>, %arg6: memref<16x128xf32, #tpu.memory_space<vmem>>, %arg7: memref<16x128xf32, #tpu.memory_space<vmem>>) attributes {dimension_semantics = [#tpu.dimension_semantics<parallel>, #tpu.dimension_semantics<parallel>, #tpu.dimension_semantics<arbitrary>], iteration_bounds = array<i64: 1, 1, 1>, scalar_prefetch = 0 : i64, scratch_operands = 1 : i64, tpu.core_type = #tpu.core_type<tc>, window_params = [{transform_indices = @transform_0, window_bounds = array<i64: 16, 32>}, {transform_indices = @transform_1, window_bounds = array<i64: 32, 128>}, {transform_indices = @transform_2, window_bounds = array<i64: 1, 128>}, {transform_indices = @transform_3, window_bounds = array<i64: 16, 128>}]} {
    %c0_i32 = arith.constant 0 : i32
    %0 = arith.cmpi eq, %arg2, %c0_i32 : i32
    %1 = arith.extui %0 : i1 to i32
    %c0_i32_0 = arith.constant 0 : i32
    %2 = arith.cmpi ne, %1, %c0_i32_0 : i32
    scf.if %2 {
      %c0_10 = arith.constant 0 : index
      %c0_11 = arith.constant 0 : index
      %12 = vector.load %arg5[%c0_10, %c0_11] : memref<1x128xf32, #tpu.memory_space<vmem>>, vector<1x128xf32>
      %13 = vector.shape_cast %12 : vector<1x128xf32> to vector<1x128xf32>
      %14 = vector.broadcast %13 : vector<1x128xf32> to vector<16x128xf32>
      %c0_12 = arith.constant 0 : index
      %c0_13 = arith.constant 0 : index
      %15 = vector.load %arg7[%c0_12, %c0_13] : memref<16x128xf32, #tpu.memory_space<vmem>>, vector<16x128xf32>
      tpu.vector_store %arg7[%c0_12, %c0_13], %14 {strides = array<i32>} : memref<16x128xf32, #tpu.memory_space<vmem>>, vector<16x128xf32>,
    } else {
    }
    %c0 = arith.constant 0 : index
    %c0_1 = arith.constant 0 : index
    %3 = vector.load %arg7[%c0, %c0_1] : memref<16x128xf32, #tpu.memory_space<vmem>>, vector<16x128xf32>
    %c0_2 = arith.constant 0 : index
    %c0_3 = arith.constant 0 : index
    %4 = vector.load %arg3[%c0_2, %c0_3] : memref<16x32xbf16, #tpu.memory_space<vmem>>, vector<16x32xbf16>
    %c0_4 = arith.constant 0 : index
    %c0_5 = arith.constant 0 : index
    %5 = vector.load %arg4[%c0_4, %c0_5] : memref<32x128xbf16, #tpu.memory_space<vmem>>, vector<32x128xbf16>
    %cst = arith.constant dense<0.000000e+00> : vector<16x128xf32>
    %6 = tpu.matmul %4, %5, %cst {dimension_numbers = #tpu.dot_dimension_numbers<[1], [0], [0], [1], [0, 0, 1, 1], [], []>} : vector<16x32xbf16>, vector<32x128xbf16>, vector<16x128xf32> -> vector<16x128xf32>
    %7 = arith.addf %3, %6 : vector<16x128xf32>
    %c0_6 = arith.constant 0 : index
    %c0_7 = arith.constant 0 : index
    %8 = vector.load %arg7[%c0_6, %c0_7] : memref<16x128xf32, #tpu.memory_space<vmem>>, vector<16x128xf32>
    tpu.vector_store %arg7[%c0_6, %c0_7], %7 {strides = array<i32>} : memref<16x128xf32, #tpu.memory_space<vmem>>, vector<16x128xf32>,
    %c0_i32_8 = arith.constant 0 : i32
    %9 = arith.cmpi eq, %arg2, %c0_i32_8 : i32
    %10 = arith.extui %9 : i1 to i32
    %c0_i32_9 = arith.constant 0 : i32
    %11 = arith.cmpi ne, %10, %c0_i32_9 : i32
    scf.if %11 {
      %c0_10 = arith.constant 0 : index
      %c0_11 = arith.constant 0 : index
      %12 = vector.load %arg7[%c0_10, %c0_11] : memref<16x128xf32, #tpu.memory_space<vmem>>, vector<16x128xf32>
      %c0_12 = arith.constant 0 : index
      %c0_13 = arith.constant 0 : index
      %13 = vector.load %arg6[%c0_12, %c0_13] : memref<16x128xf32, #tpu.memory_space<vmem>>, vector<16x128xf32>
      tpu.vector_store %arg6[%c0_12, %c0_13], %12 {strides = array<i32>} : memref<16x128xf32, #tpu.memory_space<vmem>>, vector<16x128xf32>,
    } else {
    }
    return
  }
  func.func @transform_0(%arg0: i32, %arg1: i32, %arg2: i32) -> (i32, i32) {
    %c0_i32 = arith.constant 0 : i32
    return %arg0, %arg2 : i32, i32
  }
  func.func @transform_1(%arg0: i32, %arg1: i32, %arg2: i32) -> (i32, i32) {
    %c0_i32 = arith.constant 0 : i32
    return %arg2, %arg1 : i32, i32
  }
  func.func @transform_2(%arg0: i32, %arg1: i32, %arg2: i32) -> (i32, i32) {
    %c0_i32 = arith.constant 0 : i32
    %c0_i32_0 = arith.constant 0 : i32
    return %c0_i32, %arg1 : i32, i32
  }
  func.func @transform_3(%arg0: i32, %arg1: i32, %arg2: i32) -> (i32, i32) {
    %c0_i32 = arith.constant 0 : i32
    return %arg0, %arg1 : i32, i32
  }
}

</mosaic_0001>

<bundles_post_ra>
// kernel: lora_wrapper_normal_forward.1
= control target key start
LH: loop header
LB: loop body
LE: loop exit
PB: predicated region body
PF: predicated region fallthrough
CT: control target
= control target key end

     0   :  { %v134_v0 = vmov 0.0   ;;  %vm135_vm0 = vmmov 0   ;;  %vm53_vm1 = vcmask 261120   ;;  %s174_s1 = inlined_call_operand.vmem [shape: bf16[32,128], index: 1, kind: input, shape index: {}]   ;;  %s175_s0 = inlined_call_operand.vmem [shape: bf16[16,32], index: 0, kind: input, shape index: {}]   ;;  %s176_s2 = inlined_call_operand.vmem [shape: f32[1,128], index: 2, kind: input, shape index: {}]   ;;  %s177_s3 = inlined_call_operand.vmem [shape: f32[16,128], index: 3, kind: output, shape index: {}]  }
   0x1   :  { %121 = vmatprep.subr.bf16.mxu0 %v134_v0  ;;  %v131_v1 = vld [vmem:[%s174_s1 + $0x8] sm:$0xff]   ;;  %125 = vmatprep.mubr.msk.bf16.mxu0 %vm135_vm0, %v134_v0  ;;  %v132_v2 = vld [vmem:[%s174_s1] sm:$0xff]  }
   0x2   :  { %122 = vmatpush3.bf16.msra.mxu0 %v131_v1  ;;  %v133_v3 = vld [vmem:[%s175_s0] sm:$0xff]  }
   0x3   :  { %123 = vmatprep.subr.bf16.mxu0 %v134_v0  ;;  %v113_v4 = vld [vmem:[%s176_s2] ss:$0 sm:$0xff] }
   0x6   :  { %124 = vmatpush3.bf16.msra.mxu0 %v132_v2 }
   0x9   :  { %126 = vmatmul.mubr.msk.bf16.vlgmr.msra.gmra.mxu0 %vm53_vm1, %v133_v3 }
  0xc9   :  { %v91_v5 = vpop.f32.mrf.mxu0 }
  0xca   :  { %v98_v6 = vadd.f32 %v113_v4, %v91_v5 }
  0xcb   :  { %v127_v7 = vpop.f32.mrf.mxu0 }
  0xcc   :  { %107 = vst [vmem:[%s177_s3] sm:$0xff] %v98_v6 }
  0xcd   :  { %v94_v8 = vpop.f32.mrf.mxu0 }
  0xce   :  { %v99_v9 = vadd.f32 %v113_v4, %v94_v8 }
  0xcf   :  { %v128_v10 = vpop.f32.mrf.mxu0 }
  0xd0   :  { %108 = vst [vmem:[%s177_s3 + $0x8] sm:$0xff] %v99_v9 }

</bundles_post_ra>
